<compile_context>
chip_gen: v7x
topology: tpu7x:2x2x1
jax: 0.10.0
libtpu: 0.0.40
codegen_flags: <defaults>
</compile_context>

<pallas_src>
import functools

import jax
import jax.numpy as jnp
from jax.experimental import pallas as pl
from jax.experimental.pallas import tpu as pltpu

_LANE = 128
_VMEM_SOFT_CAP = 40 * 2**20   # per-call budget safe on v5e/v6e (128 MiB) and v7x (64 MiB)


def _round_up(n, m):
    return (n + m - 1) // m * m


def _cdiv(a, b):
    return (a + b - 1) // b


def _mlp_kernel(x_ref, w1_ref, thr1_ref, w2_ref, thr2_ref, o_ref):
    """One channels-first tile: (Cin, TS) voxels -> (Cout, TS) spikes.

    x_ref   : (Cin, TS)    input voxels, spatial on lanes
    w1_ref  : (Chid, Cin)  fc1 weight with BN1 scale folded in
    thr1_ref: (Chid, 1)    per-channel LIF threshold with BN1/bias folded in
    w2_ref  : (Cout, Chid) fc2 weight with BN2 scale folded in
    thr2_ref: (Cout, 1)    per-channel LIF threshold with BN2/bias folded in
    o_ref   : (Cout, TS)   output spikes (0.0 / 1.0)
    """
    x = x_ref[...]

    # fc1 (1x1x1 conv == channel matmul); BN + bias + LIF folded into thr1.
    h = jnp.dot(w1_ref[...], x, preferred_element_type=jnp.float32)
    spk1 = (h >= thr1_ref[...]).astype(jnp.float32)

    # fc2; BN + bias + LIF folded into thr2.
    # NOTE: spk1/w2 kept in f32 — the kernel is HBM-bound at these sizes and a
    # bf16 w2 could flip spikes that land exactly on the threshold.
    y = jnp.dot(w2_ref[...], spk1, preferred_element_type=jnp.float32)
    o_ref[...] = (y >= thr2_ref[...]).astype(o_ref.dtype)


def _vmem_estimate(ts, cin, chid, cout, out_bytes):
    """Rough VMEM footprint: double-buffered x/out blocks + h/spk1 temporaries."""
    cin8 = _round_up(cin, 8)     # f32 sublane padding of the x block
    cout8 = _round_up(cout, 8)
    per_lane = 4 * (2 * cin8 + 2 * chid) + 2 * cout8 * out_bytes
    const = 4 * (chid * cin + chid + cout * chid + cout)
    return ts * per_lane + 2 * const


def _choose_tile(S, B, tile_s, cin, chid, cout, out_bytes):
    cap = max(_round_up(tile_s, _LANE), _LANE)
    if S <= cap:
        # Whole spatial extent in one block: a full-array-dim block needs no
        # 128-alignment, so ragged S costs nothing here.
        ts = S
    else:
        ts = cap                  # multiple of 128; Pallas masks the ragged last tile
    # Respect the per-generation VMEM budget (v7x: 64 MiB physical).
    while ts > _LANE and _vmem_estimate(ts, cin, chid, cout, out_bytes) > _VMEM_SOFT_CAP:
        ts = max(_round_up(ts // 2, _LANE), _LANE)
    n_s = _cdiv(S, ts)
    # v7x megacore: keep >= 2 (ideally an even number of) parallel grid steps.
    if B * n_s < 2 and S > 2 * _LANE:
        ts = _round_up(_cdiv(S, 2), _LANE)
        n_s = _cdiv(S, ts)
    elif (B % 2 == 1) and (n_s % 2 == 1) and n_s > 1:
        ts = _round_up(_cdiv(S, n_s + 1), _LANE)
        n_s = _cdiv(S, ts)
    return ts, n_s


@functools.partial(jax.jit, static_argnames=("tile_s", "out_dtype"))
def mlp_forward(x_ncdhw, params, tile_s=16384, out_dtype=jnp.float32):
    """x_ncdhw: [B, C_in, D, H, W] float32 -> [B, C_out, D, H, W] spikes (0/1)."""
    w1, thr1, w2, thr2 = params   # (Chid,Cin), (Chid,1), (Cout,Chid), (Cout,1)
    B, Cin, D, H, W = x_ncdhw.shape
    Chid = w1.shape[0]
    Cout = w2.shape[0]
    S = D * H * W
    out_bytes = jnp.dtype(out_dtype).itemsize

    # Layout-preserving flatten of the spatial dims (metadata only, no HBM pass).
    x_flat = x_ncdhw.reshape(B, Cin, S)

    ts, n_s = _choose_tile(S, B, tile_s, Cin, Chid, Cout, out_bytes)
    grid = (B, n_s)

    rep = lambda shape: pl.BlockSpec(shape, lambda b, s: (0, 0))  # constant blocks

    cost = pl.CostEstimate(
        flops=2 * B * S * (Cin * Chid + Chid * Cout),
        transcendentals=0,
        bytes_accessed=4 * B * S * Cin + out_bytes * B * S * Cout
        + 4 * (Chid * Cin + Chid + Cout * Chid + Cout),
    )

    vmem_limit = int(min(max(2 * _vmem_estimate(ts, Cin, Chid, Cout, out_bytes),
                             32 * 2**20), 48 * 2**20))

    out_flat = pl.pallas_call(
        _mlp_kernel,
        out_shape=jax.ShapeDtypeStruct((B, Cout, S), out_dtype),
        grid_spec=pltpu.PrefetchScalarGridSpec(
            num_scalar_prefetch=0,
            grid=grid,
            in_specs=[
                # NOTE: Cin/Cout=4 only fills half of each f32 vreg's sublanes;
                # harmless while HBM-bound, revisit only if channels are tunable.
                pl.BlockSpec((pl.Squeezed(), Cin, ts), lambda b, s: (b, 0, s)),  # x
                rep((Chid, Cin)),   # folded w1
                rep((Chid, 1)),     # folded thr1
                rep((Cout, Chid)),  # folded w2
                rep((Cout, 1)),     # folded thr2
            ],
            out_specs=pl.BlockSpec((pl.Squeezed(), Cout, ts),
                                   lambda b, s: (b, 0, s)),
        ),
        compiler_params=pltpu.CompilerParams(
            dimension_semantics=("parallel", "parallel"),
            vmem_limit_bytes=vmem_limit),
        cost_estimate=cost,
    )(x_flat, w1, thr1, w2, thr2)

    return out_flat.reshape(B, Cout, D, H, W)


def make_params(key, in_features, hidden_features, out_features, eps=1e-5):
    """Torch-layout Conv3d + BatchNorm3d params; fold BN + bias + LIF threshold."""
    ks = jax.random.split(key, 12)
    # Conv3d(kernel_size=1) weight: torch [Cout, Cin, 1, 1, 1] -> [Cout, Cin].
    w1 = jax.random.normal(ks[0], (hidden_features, in_features), jnp.float32) * 0.5
    b1 = jax.random.normal(ks[1], (hidden_features,), jnp.float32) * 0.1
    w2 = jax.random.normal(ks[2], (out_features, hidden_features), jnp.float32) * 0.5
    b2 = jax.random.normal(ks[3], (out_features,), jnp.float32) * 0.1
    # BatchNorm3d (inference) params.
    g1 = 1.0 + 0.1 * jax.random.normal(ks[4], (hidden_features,), jnp.float32)
    beta1 = 0.1 * jax.random.normal(ks[5], (hidden_features,), jnp.float32)
    mu1 = 0.1 * jax.random.normal(ks[6], (hidden_features,), jnp.float32)
    var1 = jnp.abs(1.0 + 0.1 * jax.random.normal(ks[7], (hidden_features,), jnp.float32))
    g2 = 1.0 + 0.1 * jax.random.normal(ks[8], (out_features,), jnp.float32)
    beta2 = 0.1 * jax.random.normal(ks[9], (out_features,), jnp.float32)
    mu2 = 0.1 * jax.random.normal(ks[10], (out_features,), jnp.float32)
    var2 = jnp.abs(1.0 + 0.1 * jax.random.normal(ks[11], (out_features,), jnp.float32))

    # Fold BN into the conv:  BN(Wx + b) = (W*s) x + (b - mu)*s + beta.
    # Fold bias into the LIF threshold:  h + bf >= 2.0  <=>  h >= 2.0 - bf.
    s1 = g1 / jnp.sqrt(var1 + eps)
    w1f = w1 * s1[:, None]
    thr1 = 2.0 - ((b1 - mu1) * s1 + beta1)
    s2 = g2 / jnp.sqrt(var2 + eps)
    w2f = w2 * s2[:, None]
    thr2 = 2.0 - ((b2 - mu2) * s2 + beta2)
    return (w1f, thr1[:, None], w2f, thr2[:, None])


def reference_forward(x_ncdhw, params):
    """Pure-JAX reference (same folded math) for correctness checks."""
    w1, thr1, w2, thr2 = params
    B, Cin, D, H, W = x_ncdhw.shape
    x = x_ncdhw.reshape(B, Cin, -1)
    h = jnp.einsum('hc,bcs->bhs', w1, x)
    spk1 = (h >= thr1[None]).astype(jnp.float32)
    y = jnp.einsum('oh,bhs->bos', w2, spk1)
    spk2 = (y >= thr2[None]).astype(jnp.float32)
    return spk2.reshape(B, -1, D, H, W)


if __name__ == "__main__":
    key = jax.random.PRNGKey(0)
    k_x, k_p, k_x2 = jax.random.split(key, 3)

    B, C_in, Dd, Hh, Ww = 2, 4, 8, 16, 16      # S = D*H*W = 2048
    hidden, C_out = 32, 4

    x = jax.random.normal(k_x, (B, C_in, Dd, Hh, Ww), jnp.float32) * 3.0
    params = make_params(k_p, C_in, hidden, C_out)

    out = jax.block_until_ready(mlp_forward(x, params))
    ref = reference_forward(x, params)
    assert out.shape == (B, C_out, Dd, Hh, Ww)
    assert jnp.allclose(out, ref), "Pallas output mismatch vs JAX reference"

    # Ragged spatial extent (S = 3*7*5 = 105, not a multiple of 128): handled
    # entirely in-kernel (full-extent block), no pad/slice passes in the wrapper.
    x2 = jax.random.normal(k_x2, (1, C_in, 3, 7, 5), jnp.float32) * 3.0
    out2 = jax.block_until_ready(mlp_forward(x2, params))
    ref2 = reference_forward(x2, params)
    assert out2.shape == (1, C_out, 3, 7, 5)
    assert jnp.allclose(out2, ref2), "Pallas output mismatch vs reference (ragged tile)"

    print("KERNEL_OK")
</pallas_src>

<mosaic_0001>
module attributes {stable_mosaic.version = 11 : i64} {
  func.func @_mlp_kernel(%arg0: i32, %arg1: i32, %arg2: memref<1x4x2048xf32, #tpu.memory_space<vmem>>, %arg3: memref<32x4xf32, #tpu.memory_space<vmem>>, %arg4: memref<32x1xf32, #tpu.memory_space<vmem>>, %arg5: memref<4x32xf32, #tpu.memory_space<vmem>>, %arg6: memref<4x1xf32, #tpu.memory_space<vmem>>, %arg7: memref<1x4x2048xf32, #tpu.memory_space<vmem>>) attributes {dimension_semantics = [#tpu.dimension_semantics<parallel>, #tpu.dimension_semantics<parallel>], iteration_bounds = array<i64: 2, 1>, scalar_prefetch = 0 : i64, scratch_operands = 0 : i64, tpu.core_type = #tpu.core_type<tc>, window_params = [{transform_indices = @transform_0, window_bounds = array<i64: 1, 4, 2048>}, {pipeline_mode = #tpu.pipeline_mode<synchronous>, transform_indices = @transform_1, window_bounds = array<i64: 32, 4>}, {pipeline_mode = #tpu.pipeline_mode<synchronous>, transform_indices = @transform_2, window_bounds = array<i64: 32, 1>}, {pipeline_mode = #tpu.pipeline_mode<synchronous>, transform_indices = @transform_3, window_bounds = array<i64: 4, 32>}, {pipeline_mode = #tpu.pipeline_mode<synchronous>, transform_indices = @transform_4, window_bounds = array<i64: 4, 1>}, {transform_indices = @transform_5, window_bounds = array<i64: 1, 4, 2048>}]} {
    %c0 = arith.constant 0 : index
    %c0_0 = arith.constant 0 : index
    %c0_1 = arith.constant 0 : index
    %0 = vector.load %arg2[%c0, %c0_0, %c0_1] : memref<1x4x2048xf32, #tpu.memory_space<vmem>>, vector<1x4x2048xf32>
    %1 = vector.shape_cast %0 : vector<1x4x2048xf32> to vector<4x2048xf32>
    %c0_2 = arith.constant 0 : index
    %c0_3 = arith.constant 0 : index
    %2 = vector.load %arg3[%c0_2, %c0_3] : memref<32x4xf32, #tpu.memory_space<vmem>>, vector<32x4xf32>
    %cst = arith.constant dense<0.000000e+00> : vector<32x2048xf32>
    %3 = tpu.matmul %2, %1, %cst {dimension_numbers = #tpu.dot_dimension_numbers<[1], [0], [0], [1], [0, 0, 1, 1], [], []>} : vector<32x4xf32>, vector<4x2048xf32>, vector<32x2048xf32> -> vector<32x2048xf32>
    %c0_4 = arith.constant 0 : index
    %c0_5 = arith.constant 0 : index
    %4 = vector.load %arg4[%c0_4, %c0_5] : memref<32x1xf32, #tpu.memory_space<vmem>>, vector<32x1xf32>
    %5 = vector.broadcast %4 : vector<32x1xf32> to vector<32x2048xf32>
    %6 = arith.cmpf oge, %3, %5 : vector<32x2048xf32>
    %7 = arith.extui %6 : vector<32x2048xi1> to vector<32x2048xi32>
    %8 = arith.sitofp %7 : vector<32x2048xi32> to vector<32x2048xf32>
    %c0_6 = arith.constant 0 : index
    %c0_7 = arith.constant 0 : index
    %9 = vector.load %arg5[%c0_6, %c0_7] : memref<4x32xf32, #tpu.memory_space<vmem>>, vector<4x32xf32>
    %cst_8 = arith.constant dense<0.000000e+00> : vector<4x2048xf32>
    %10 = tpu.matmul %9, %8, %cst_8 {dimension_numbers = #tpu.dot_dimension_numbers<[1], [0], [0], [1], [0, 0, 1, 1], [], []>} : vector<4x32xf32>, vector<32x2048xf32>, vector<4x2048xf32> -> vector<4x2048xf32>
    %c0_9 = arith.constant 0 : index
    %c0_10 = arith.constant 0 : index
    %11 = vector.load %arg6[%c0_9, %c0_10] : memref<4x1xf32, #tpu.memory_space<vmem>>, vector<4x1xf32>
    %12 = vector.broadcast %11 : vector<4x1xf32> to vector<4x2048xf32>
    %13 = arith.cmpf oge, %10, %12 : vector<4x2048xf32>
    %14 = arith.extui %13 : vector<4x2048xi1> to vector<4x2048xi32>
    %15 = arith.sitofp %14 : vector<4x2048xi32> to vector<4x2048xf32>
    %c0_11 = arith.constant 0 : index
    %c0_12 = arith.constant 0 : index
    %c0_13 = arith.constant 0 : index
    %16 = vector.load %arg7[%c0_11, %c0_12, %c0_13] : memref<1x4x2048xf32, #tpu.memory_space<vmem>>, vector<1x4x2048xf32>
    %17 = vector.shape_cast %16 : vector<1x4x2048xf32> to vector<4x2048xf32>
    %18 = vector.shape_cast %15 : vector<4x2048xf32> to vector<1x4x2048xf32>
    tpu.vector_store %arg7[%c0_11, %c0_12, %c0_13], %18 {strides = array<i32>} : memref<1x4x2048xf32, #tpu.memory_space<vmem>>, vector<1x4x2048xf32>,
    return
  }
  func.func @transform_0(%arg0: i32, %arg1: i32) -> (i32, i32, i32) {
    %c0_i32 = arith.constant 0 : i32
    %c0_i32_0 = arith.constant 0 : i32
    return %arg0, %c0_i32, %arg1 : i32, i32, i32
  }
  func.func @transform_1(%arg0: i32, %arg1: i32) -> (i32, i32) {
    %c0_i32 = arith.constant 0 : i32
    %c0_i32_0 = arith.constant 0 : i32
    %c0_i32_1 = arith.constant 0 : i32
    return %c0_i32, %c0_i32_0 : i32, i32
  }
  func.func @transform_2(%arg0: i32, %arg1: i32) -> (i32, i32) {
    %c0_i32 = arith.constant 0 : i32
    %c0_i32_0 = arith.constant 0 : i32
    %c0_i32_1 = arith.constant 0 : i32
    return %c0_i32, %c0_i32_0 : i32, i32
  }
  func.func @transform_3(%arg0: i32, %arg1: i32) -> (i32, i32) {
    %c0_i32 = arith.constant 0 : i32
    %c0_i32_0 = arith.constant 0 : i32
    %c0_i32_1 = arith.constant 0 : i32
    return %c0_i32, %c0_i32_0 : i32, i32
  }
  func.func @transform_4(%arg0: i32, %arg1: i32) -> (i32, i32) {
    %c0_i32 = arith.constant 0 : i32
    %c0_i32_0 = arith.constant 0 : i32
    %c0_i32_1 = arith.constant 0 : i32
    return %c0_i32, %c0_i32_0 : i32, i32
  }
  func.func @transform_5(%arg0: i32, %arg1: i32) -> (i32, i32, i32) {
    %c0_i32 = arith.constant 0 : i32
    %c0_i32_0 = arith.constant 0 : i32
    return %arg0, %c0_i32, %arg1 : i32, i32, i32
  }
}

</mosaic_0001>

<bundles_post_ra>
// kernel: mlp_forward.1
= control target key start
LH: loop header
LB: loop body
LE: loop exit
PB: predicated region body
PF: predicated region fallthrough
CT: control target
= control target key end

     0   :  { %s2391_s18 = smov 0   ;;  %s2393_s19 = smov 0   ;;  %s2773_s0 = inlined_call_operand.vmem [shape: f32[2,4,2048], index: 0, kind: input, shape index: {}]   ;;  %s2774_s1 = inlined_call_operand.vmem [shape: f32[32,4], index: 1, kind: input, shape index: {}]   ;;  %s2775_s2 = inlined_call_operand.vmem [shape: f32[32,1], index: 2, kind: input, shape index: {}]   ;;  %s2776_s3 = inlined_call_operand.vmem [shape: f32[4,32], index: 3, kind: input, shape index: {}]   ;;  %s2777_s4 = inlined_call_operand.vmem [shape: f32[4,1], index: 4, kind: input, shape index: {}]   ;;  %s2778_s5 = inlined_call_operand.vmem [shape: f32[2,4,2048], index: 5, kind: output, shape index: {}]  }
   0x1   :  { %s2395_s20 = smov 0  }
   0x2 LB: > { %s27_s21 = sadd.s32 1, %s2352_s19  ;;  %p2024_p0 = scmp.ge.s32.totalorder %s2356_s20, 1  ;;  %s2356_s20 = sphi %s2395_s20, %s15_s20   ;;  %s2352_s19 = sphi %s2393_s19, %s2786_s19   ;;  %s2348_s18 = sphi %s2391_s18, %s2785_s18  }
   0x3   : > { %p29_p1 = scmp.ge.s32.totalorder %s27_s21, 2  ;;  %p208_p2 = scmp.lt.s32.totalorder %s2356_s20, 3 }
   0x5   : > { %s2788_s21 = smov (%p29_p1, %s27_s21), 0  ;;  %p209_p3 = pnand %p2024_p0, %p208_p2 }
   0x6   : > { %p245_p4 = scmp.lt.s32.totalorder (!%p209_p3), %s2348_s18, 1  ;;  %v2358_v0 = vmov (!%p209_p3), 0.0   ;;  %v1050_v1 = vld [vmem:[%s2775_s2] sm:$0xff] (!%p209_p3)  ;;  %v2359_v2 = vmov (!%p209_p3), 0   ;;  %v1052_v3 = vld [vmem:[%s2775_s2 + $0x10] sm:$0xff] (!%p209_p3)  ;;  %v1051_v4 = vld [vmem:[%s2775_s2 + $0x8] sm:$0xff] (!%p209_p3) }
   0x7   : > { %212 = sbr.rel (%p209_p3) target bundleno = 521 (0x209), region = 40  ;;  %402 = vmatprep.mubr.f32.mxu0 (!%p209_p3), %v2358_v0  ;;  %491 = vmatprep.mubr.f32.mxu1 (!%p209_p3), %v2358_v0  ;;  %v1053_v5 = vld [vmem:[%s2775_s2 + $0x18] sm:$0xff] (!%p209_p3)  ;;  %vm305_vm0 = vcmask (!%p209_p3), 1043456   ;;  %v2440_v12 = vld [vmem:[%s2774_s1] sm:$0xff] (!%p209_p3)  ;;  %vm292_vm1 = vcmask (!%p209_p3), 31744   ;;  %v2457_v17 = vld [vmem:[%s2774_s1 + $0x8] sm:$0xff] (!%p209_p3) }
   0x8   : > { %2324 = vset.pattern.permute.xlu0 (!%p209_p3), %v2359_v2  ;;  %2325 = vset.pattern.permute.xlu1 (!%p209_p3), %v2359_v2  ;;  %v1839_v20 = vld [vmem:[%s2777_s4] sm:$0xf] (!%p209_p3)  ;;  %v2475_v21 = vld [vmem:[%s2774_s1 + $0x10] sm:$0xff] (!%p209_p3)  ;;  %v275_v22 = vld [vmem:[%s2774_s1 + $0x18] sm:$0xff] (!%p209_p3)  ;;  %v2360_v40 = vmov (!%p209_p3), 1.0|1.0  }
   0x9   : > { %1056 = vperm.xlu0 (!%p209_p3), %2324, %v1050_v1   ;;  %1066 = vperm.xlu1 (!%p209_p3), %2325, %v1052_v3   ;;  %v2600_v52 = vld [vmem:[%s2776_s3] sm:$0xf] (!%p209_p3) }
   0xd   : > { %1061 = vperm.xlu0 (!%p209_p3), %2324, %v1051_v4   ;;  %1071 = vperm.xlu1 (!%p209_p3), %2325, %v1053_v5  }
   0xe   : > { %s2790_s18 = smov (!%p245_p4, %s2348_s18), 1 }
   0xf   : > { %s2231_s26 = sshll.u32 %s2790_s18, 6 }
  0x10   : > { %s2431_s8 = scalar_lea.vmem %s2773_s0, %s2231_s26  ;;  %s2727_s28 = scalar_lea.vmem %s2778_s5, %s2231_s26 }
  0x11   : > { %v264_v6 = vld [vmem:[%s2431_s8] sm:$0xff]  ;;  %v265_v7 = vld [vmem:[%s2431_s8 + $0x8] sm:$0xff]  ;;  %v266_v8 = vld [vmem:[%s2431_s8 + $0x10] sm:$0xff]  ;;  %1842 = vperm.xlu0 %2324, %v1839_v20  }
  0x12   : > { %v284_v9 = vcombine.high %v264_v6, %v264_v6  ;;  %v285_v10 = vcombine.high %v265_v7, %v265_v7  ;;  %v267_v11 = vld [vmem:[%s2431_s8 + $0x18] sm:$0xff]  ;;  %v286_v13 = vcombine.high %v266_v8, %v266_v8  ;;  %v268_v15 = vld [vmem:[%s2431_s8 + $0x20] sm:$0xff]  ;;  %v269_v16 = vld [vmem:[%s2431_s8 + $0x28] sm:$0xff] }
  0x13   : > { %v287_v14 = vcombine.high %v267_v11, %v267_v11  ;;  %v288_v18 = vcombine.high %v268_v15, %v268_v15  ;;  %v289_v19 = vcombine.high %v269_v16, %v269_v16  ;;  %v270_v23 = vld [vmem:[%s2431_s8 + $0x30] sm:$0xff]  ;;  %v271_v24 = vld [vmem:[%s2431_s8 + $0x38] sm:$0xff] }
  0x14   : > { %2029 = vmatprep.subr.msk.mxu0 %vm305_vm0, %v284_v9  ;;  %2035 = vmatprep.subr.msk.mxu1 %vm305_vm0, %v285_v10  ;;  %v290_v25 = vcombine.high %v270_v23, %v270_v23  ;;  %v291_v26 = vcombine.high %v271_v24, %v271_v24 }
  0x15   : > { %2030 = vmatpush1.msk.msra.mxu0 %vm305_vm0, %v264_v6  ;;  %2036 = vmatpush1.msk.msra.mxu1 %vm305_vm0, %v265_v7 }
  0x16   : > { %2031 = vmatmul.mubr.msk.f32.vlgmr.msra.gmra.mrb[0].mxu0 %vm292_vm1, %v2440_v12  ;;  %2037 = vmatmul.mubr.msk.f32.vlgmr.msra.gmra.mrb[0].mxu1 %vm292_vm1, %v2440_v12 }
  0x17   : > { %2041 = vmatprep.subr.msk.mxu0 %vm305_vm0, %v286_v13  ;;  %2047 = vmatprep.subr.msk.mxu1 %vm305_vm0, %v287_v14 }
  0x18   : > { %2042 = vmatpush1.msk.msra.mxu0 %vm305_vm0, %v266_v8  ;;  %2048 = vmatpush1.msk.msra.mxu1 %vm305_vm0, %v267_v11 }
  0x19   : > { %408 = vmatprep.mubr.f32.mxu0 %v2358_v0  ;;  %497 = vmatprep.mubr.f32.mxu1 %v2358_v0 }
  0x1a   : > { %2032 = vmatmul.mubr.msk.f32.gmra.mrb[2].mxu0 %vm292_vm1, %v2457_v17  ;;  %2038 = vmatmul.mubr.msk.f32.gmra.mrb[2].mxu1 %vm292_vm1, %v2457_v17 }
  0x1b   : > { %414 = vmatprep.mubr.f32.mxu0 %v2358_v0  ;;  %503 = vmatprep.mubr.f32.mxu1 %v2358_v0 }
  0x1c   : > { %2053 = vmatprep.subr.msk.mxu0 %vm305_vm0, %v288_v18  ;;  %2059 = vmatprep.subr.msk.mxu1 %vm305_vm0, %v289_v19 }
  0x1e   : > { %2033 = vmatmul.mubr.msk.f32.gmra.mrb[4].mxu0 %vm292_vm1, %v2475_v21  ;;  %2039 = vmatmul.mubr.msk.f32.gmra.mrb[4].mxu1 %vm292_vm1, %v2475_v21 }
  0x1f   : > { %420 = vmatprep.mubr.f32.mxu0 %v2358_v0  ;;  %509 = vmatprep.mubr.f32.mxu1 %v2358_v0 }
  0x22   : > { %2034 = vmatmul.mubr.msk.f32.gmra.mrb[6].mxu0 %vm292_vm1, %v275_v22  ;;  %2040 = vmatmul.mubr.msk.f32.gmra.mrb[6].mxu1 %vm292_vm1, %v275_v22 }
  0x23   : > { %580 = vmatprep.mubr.f32.mxu0 %v2358_v0  ;;  %669 = vmatprep.mubr.f32.mxu1 %v2358_v0 }
  0x26   : > { %2043 = vmatmul.mubr.msk.f32.vlgmr.msra.gmra.mrb[8].mxu0 %vm292_vm1, %v2440_v12  ;;  %2049 = vmatmul.mubr.msk.f32.vlgmr.msra.gmra.mrb[8].mxu1 %vm292_vm1, %v2440_v12 }
  0x27   : > { %2054 = vmatpush1.msk.msra.mxu0 %vm305_vm0, %v268_v15  ;;  %2060 = vmatpush1.msk.msra.mxu1 %vm305_vm0, %v269_v16 }
  0x28   : > { %586 = vmatprep.mubr.f32.mxu0 %v2358_v0  ;;  %675 = vmatprep.mubr.f32.mxu1 %v2358_v0 }
  0x29   : > { %2065 = vmatprep.subr.msk.mxu0 %vm305_vm0, %v290_v25  ;;  %2071 = vmatprep.subr.msk.mxu1 %vm305_vm0, %v291_v26 }
  0x2a   : > { %2044 = vmatmul.mubr.msk.f32.gmra.mrb[10].mxu0 %vm292_vm1, %v2457_v17  ;;  %2050 = vmatmul.mubr.msk.f32.gmra.mrb[10].mxu1 %vm292_vm1, %v2457_v17 }
  0x2b   : > { %592 = vmatprep.mubr.f32.mxu0 %v2358_v0  ;;  %681 = vmatprep.mubr.f32.mxu1 %v2358_v0 }
  0x2e   : > { %2045 = vmatmul.mubr.msk.f32.gmra.mrb[12].mxu0 %vm292_vm1, %v2475_v21  ;;  %2051 = vmatmul.mubr.msk.f32.gmra.mrb[12].mxu1 %vm292_vm1, %v2475_v21 }
  0x2f   : > { %598 = vmatprep.mubr.f32.mxu0 %v2358_v0  ;;  %687 = vmatprep.mubr.f32.mxu1 %v2358_v0 }
  0x32   : > { %2046 = vmatmul.mubr.msk.f32.gmra.mrb[14].mxu0 %vm292_vm1, %v275_v22  ;;  %2052 = vmatmul.mubr.msk.f32.gmra.mrb[14].mxu1 %vm292_vm1, %v275_v22 }
  0x33   : > { %758 = vmatprep.mubr.f32.mxu0 %v2358_v0  ;;  %847 = vmatprep.mubr.f32.mxu1 %v2358_v0 }
  0x36   : > { %2055 = vmatmul.mubr.msk.f32.vlgmr.msra.gmra.mrb[16].mxu0 %vm292_vm1, %v2440_v12  ;;  %2061 = vmatmul.mubr.msk.f32.vlgmr.msra.gmra.mrb[16].mxu1 %vm292_vm1, %v2440_v12 }
  0x37   : > { %2066 = vmatpush1.msk.msra.mxu0 %vm305_vm0, %v270_v23  ;;  %2072 = vmatpush1.msk.msra.mxu1 %vm305_vm0, %v271_v24 }
  0x38   : > { %764 = vmatprep.mubr.f32.mxu0 %v2358_v0  ;;  %853 = vmatprep.mubr.f32.mxu1 %v2358_v0 }
  0x3a   : > { %2056 = vmatmul.mubr.msk.f32.gmra.mrb[18].mxu0 %vm292_vm1, %v2457_v17  ;;  %2062 = vmatmul.mubr.msk.f32.gmra.mrb[18].mxu1 %vm292_vm1, %v2457_v17 }
  0x3b   : > { %770 = vmatprep.mubr.f32.mxu0 %v2358_v0  ;;  %859 = vmatprep.mubr.f32.mxu1 %v2358_v0 }
  0x3e   : > { %2057 = vmatmul.mubr.msk.f32.gmra.mrb[20].mxu0 %vm292_vm1, %v2475_v21  ;;  %2063 = vmatmul.mubr.msk.f32.gmra.mrb[20].mxu1 %vm292_vm1, %v2475_v21 }
  0x3f   : > { %776 = vmatprep.mubr.f32.mxu0 %v2358_v0  ;;  %865 = vmatprep.mubr.f32.mxu1 %v2358_v0 }
  0x42   : > { %2058 = vmatmul.mubr.msk.f32.gmra.mrb[22].mxu0 %vm292_vm1, %v275_v22  ;;  %2064 = vmatmul.mubr.msk.f32.gmra.mrb[22].mxu1 %vm292_vm1, %v275_v22 }
  0x43   : > { %936 = vmatprep.mubr.f32.mxu0 %v2358_v0  ;;  %1025 = vmatprep.mubr.f32.mxu1 %v2358_v0 }
  0x46   : > { %2067 = vmatmul.mubr.msk.f32.vlgmr.msra.gmra.mrb[24].mxu0 %vm292_vm1, %v2440_v12  ;;  %2073 = vmatmul.mubr.msk.f32.vlgmr.msra.gmra.mrb[24].mxu1 %vm292_vm1, %v2440_v12 }
  0x47   : > { %942 = vmatprep.mubr.f32.mxu0 %v2358_v0  ;;  %1031 = vmatprep.mubr.f32.mxu1 %v2358_v0 }
  0x4a   : > { %2068 = vmatmul.mubr.msk.f32.gmra.mrb[26].mxu0 %vm292_vm1, %v2457_v17  ;;  %2074 = vmatmul.mubr.msk.f32.gmra.mrb[26].mxu1 %vm292_vm1, %v2457_v17 }
  0x4b   : > { %948 = vmatprep.mubr.f32.mxu0 %v2358_v0  ;;  %1037 = vmatprep.mubr.f32.mxu1 %v2358_v0 }
  0x4e   : > { %2069 = vmatmul.mubr.msk.f32.gmra.mrb[28].mxu0 %vm292_vm1, %v2475_v21  ;;  %2075 = vmatmul.mubr.msk.f32.gmra.mrb[28].mxu1 %vm292_vm1, %v2475_v21 }
  0x4f   : > { %954 = vmatprep.mubr.f32.mxu0 %v2358_v0  ;;  %1043 = vmatprep.mubr.f32.mxu1 %v2358_v0 }
  0x52   : > { %2070 = vmatmul.mubr.msk.f32.gmra.mrb[30].mxu0 %vm292_vm1, %v275_v22  ;;  %2076 = vmatmul.mubr.msk.f32.gmra.mrb[30].mxu1 %vm292_vm1, %v275_v22 }
  0x53   : > { %1335 = vmatprep.mubr.f32.mxu0 %v2358_v0  ;;  %1406 = vmatprep.mubr.f32.mxu1 %v2358_v0 }
  0x88   : > { %v2566_v27 = vpop.permute.xlu0 %1056  ;;  %v2570_v33 = vpop.permute.xlu1 %1066 }
  0x8c   : > { %v2568_v32 = vpop.permute.xlu0 %1061  ;;  %v2583_v43 = vpop.permute.xlu1 %1071 }
  0xe9   : > { %v404_v28 = vpop.f32.mrb[0].mxu0  ;;  %v493_v29 = vpop.f32.mrb[0].mxu1 }
  0xea   : > { %v406_v30 = vpop.f32.mrb[1].mxu0  ;;  %v495_v31 = vpop.f32.mrb[1].mxu1  ;;  %vm1074_vm2 = vcmp.ge.f32.partialorder %v404_v28, %v2566_v27  ;;  %vm1076_vm5 = vcmp.ge.f32.partialorder %v493_v29, %v2566_v27 }
  0xeb   : > { %vm1075_vm9 = vcmp.ge.f32.partialorder %v406_v30, %v2566_v27  ;;  %vm1077_vm11 = vcmp.ge.f32.partialorder %v495_v31, %v2566_v27 }
  0xed   : > { %v410_v34 = vpop.f32.mrb[2].mxu0  ;;  %v499_v35 = vpop.f32.mrb[2].mxu1 }
  0xee   : > { %vm1090_vm3 = vcmp.ge.f32.partialorder %v410_v34, %v2568_v32  ;;  %vm1092_vm4 = vcmp.ge.f32.partialorder %v499_v35, %v2568_v32  ;;  %v412_v36 = vpop.f32.mrb[3].mxu0  ;;  %v501_v37 = vpop.f32.mrb[3].mxu1 }
  0xef   : > { %vm2235_vm6 = vmpackc.low %vm1090_vm3, %vm1074_vm2  ;;  %vm1091_vm7 = vcmp.ge.f32.partialorder %v412_v36, %v2568_v32  ;;  %vm1093_vm8 = vcmp.ge.f32.partialorder %v501_v37, %v2568_v32 }
  0xf0   : > { %vm2243_vm10 = vmpackc.low %vm1092_vm4, %vm1076_vm5 }
  0xf1   : > { %vm2233_vm12 = vmpackc.low %vm1091_vm7, %vm1075_vm9  ;;  %v416_v38 = vpop.f32.mrb[4].mxu0  ;;  %v505_v39 = vpop.f32.mrb[4].mxu1 }
  0xf2   : > { %vm2241_vm13 = vmpackc.low %vm1093_vm8, %vm1077_vm11  ;;  %2234 = vmatprep.subr.msk.bf16.mxu0 %vm2233_vm12, %v2360_v40  ;;  %v418_v41 = vpop.f32.mrb[5].mxu0  ;;  %v507_v42 = vpop.f32.mrb[5].mxu1  ;;  %vm1106_vm14 = vcmp.ge.f32.partialorder %v416_v38, %v2570_v33  ;;  %vm1108_vm1 = vcmp.ge.f32.partialorder %v505_v39, %v2570_v33 }
  0xf3   : > { %2242 = vmatprep.subr.msk.bf16.mxu1 %vm2241_vm13, %v2360_v40  ;;  %2236 = vmatpush1.bf16.msk.msra.mxu0 %vm2235_vm6, %v2360_v40  ;;  %vm1107_vm5 = vcmp.ge.f32.partialorder %v418_v41, %v2570_v33  ;;  %vm1109_vm7 = vcmp.ge.f32.partialorder %v507_v42, %v2570_v33  ;;  %v2715_v38 = vpop.permute.xlu0 %1842 }
  0xf4   : > { %2244 = vmatpush1.bf16.msk.msra.mxu1 %vm2243_vm10, %v2360_v40  ;;  %vm1267_vm10 = vcmask 261120  }
  0xf5   : > { %v422_v44 = vpop.f32.mrb[6].mxu0  ;;  %v511_v45 = vpop.f32.mrb[6].mxu1 }
  0xf6   : > { %vm1122_vm15 = vcmp.ge.f32.partialorder %v422_v44, %v2583_v43  ;;  %vm1124_vm0 = vcmp.ge.f32.partialorder %v511_v45, %v2583_v43  ;;  %v424_v46 = vpop.f32.mrb[7].mxu0  ;;  %v513_v47 = vpop.f32.mrb[7].mxu1 }
  0xf7   : > { %vm2239_vm2 = vmpackc.low %vm1122_vm15, %vm1106_vm14  ;;  %vm1123_vm3 = vcmp.ge.f32.partialorder %v424_v46, %v2583_v43  ;;  %vm1125_vm4 = vcmp.ge.f32.partialorder %v513_v47, %v2583_v43 }
  0xf8   : > { %vm2247_vm6 = vmpackc.low %vm1124_vm0, %vm1108_vm1 }
  0xf9   : > { %vm2237_vm8 = vmpackc.low %vm1123_vm3, %vm1107_vm5  ;;  %v582_v48 = vpop.f32.mrb[8].mxu0  ;;  %v671_v49 = vpop.f32.mrb[8].mxu1 }
  0xfa   : > { %vm2245_vm9 = vmpackc.low %vm1125_vm4, %vm1109_vm7  ;;  %2238 = vmatprep.subr.msk.bf16.mxu0 %vm2237_vm8, %v2360_v40  ;;  %v584_v50 = vpop.f32.mrb[9].mxu0  ;;  %v673_v51 = vpop.f32.mrb[9].mxu1  ;;  %vm1078_vm11 = vcmp.ge.f32.partialorder %v582_v48, %v2566_v27  ;;  %vm1080_vm14 = vcmp.ge.f32.partialorder %v671_v49, %v2566_v27 }
  0xfb   : > { %2246 = vmatprep.subr.msk.bf16.mxu1 %vm2245_vm9, %v2360_v40  ;;  %2240 = vmatpush1.bf16.msk.msra.mxu0 %vm2239_vm2, %v2360_v40  ;;  %vm1079_vm2 = vcmp.ge.f32.partialorder %v584_v50, %v2566_v27  ;;  %vm1081_vm4 = vcmp.ge.f32.partialorder %v673_v51, %v2566_v27 }
  0xfc   : > { %2248 = vmatpush1.bf16.msk.msra.mxu1 %vm2247_vm6, %v2360_v40 }
  0xfd   : > { %v588_v53 = vpop.f32.mrb[10].mxu0  ;;  %v677_v54 = vpop.f32.mrb[10].mxu1 }
  0xfe   : > { %vm1094_vm12 = vcmp.ge.f32.partialorder %v588_v53, %v2568_v32  ;;  %vm1096_vm13 = vcmp.ge.f32.partialorder %v677_v54, %v2568_v32  ;;  %2149 = vmatmul.mubr.msk.f32.vlgmr.msra.gmra.mrb[32].mxu0 %vm1267_vm10, %v2600_v52  ;;  %v590_v55 = vpop.f32.mrb[11].mxu0  ;;  %v679_v56 = vpop.f32.mrb[11].mxu1 }
  0xff   : > { %vm2609_vm15 = vmpackc.low %vm1094_vm12, %vm1078_vm11  ;;  %2158 = vmatmul.mubr.msk.f32.vlgmr.msra.gmra.mrb[32].mxu1 %vm1267_vm10, %v2600_v52  ;;  %vm1095_vm0 = vcmp.ge.f32.partialorder %v590_v55, %v2568_v32  ;;  %vm1097_vm1 = vcmp.ge.f32.partialorder %v679_v56, %v2568_v32  ;;  %1477 = vmatprep.mubr.f32.mxu0 %v2358_v0 }
 0x100   : > { %vm2259_vm3 = vmpackc.low %vm1096_vm13, %vm1080_vm14  ;;  %1548 = vmatprep.mubr.f32.mxu1 %v2358_v0 }
 0x101   : > { %vm2249_vm5 = vmpackc.low %vm1095_vm0, %vm1079_vm2  ;;  %v594_v58 = vpop.f32.mrb[12].mxu0  ;;  %v683_v59 = vpop.f32.mrb[12].mxu1 }
 0x102   : > { %vm2257_vm6 = vmpackc.low %vm1097_vm1, %vm1081_vm4  ;;  %2250 = vmatprep.subr.msk.bf16.mxu0 %vm2249_vm5, %v2360_v40  ;;  %v596_v60 = vpop.f32.mrb[13].mxu0  ;;  %v685_v61 = vpop.f32.mrb[13].mxu1  ;;  %vm1110_vm7 = vcmp.ge.f32.partialorder %v594_v58, %v2570_v33  ;;  %vm1112_vm11 = vcmp.ge.f32.partialorder %v683_v59, %v2570_v33 }
 0x103   : > { %2258 = vmatprep.subr.msk.bf16.mxu1 %vm2257_vm6, %v2360_v40  ;;  %2252 = vmatpush1.bf16.msk.msra.mxu0 %vm2609_vm15, %v2360_v40  ;;  %vm1111_vm15 = vcmp.ge.f32.partialorder %v596_v60, %v2570_v33  ;;  %vm1113_vm1 = vcmp.ge.f32.partialorder %v685_v61, %v2570_v33 }
 0x104   : > { %2260 = vmatpush1.bf16.msk.msra.mxu1 %vm2259_vm3, %v2360_v40 }
 0x105   : > { %v600_v62 = vpop.f32.mrb[14].mxu0  ;;  %v689_v63 = vpop.f32.mrb[14].mxu1 }
 0x106   : > { %vm1126_vm8 = vcmp.ge.f32.partialorder %v600_v62, %v2583_v43  ;;  %vm1128_vm9 = vcmp.ge.f32.partialorder %v689_v63, %v2583_v43  ;;  %v602_v1 = vpop.f32.mrb[15].mxu0  ;;  %v691_v2 = vpop.f32.mrb[15].mxu1 }
 0x107   : > { %vm2255_vm12 = vmpackc.low %vm1126_vm8, %vm1110_vm7  ;;  %vm1127_vm13 = vcmp.ge.f32.partialorder %v602_v1, %v2583_v43  ;;  %vm1129_vm14 = vcmp.ge.f32.partialorder %v691_v2, %v2583_v43 }
 0x108   : > { %vm2263_vm0 = vmpackc.low %vm1128_vm9, %vm1112_vm11 }
 0x109   : > { %vm2253_vm2 = vmpackc.low %vm1127_vm13, %vm1111_vm15  ;;  %v760_v3 = vpop.f32.mrb[16].mxu0  ;;  %v849_v4 = vpop.f32.mrb[16].mxu1 }
 0x10a   : > { %vm2261_vm3 = vmpackc.low %vm1129_vm14, %vm1113_vm1  ;;  %2254 = vmatprep.subr.msk.bf16.mxu0 %vm2253_vm2, %v2360_v40  ;;  %v762_v5 = vpop.f32.mrb[17].mxu0  ;;  %v851_v6 = vpop.f32.mrb[17].mxu1  ;;  %vm1082_vm4 = vcmp.ge.f32.partialorder %v760_v3, %v2566_v27  ;;  %vm1084_vm7 = vcmp.ge.f32.partialorder %v849_v4, %v2566_v27 }
 0x10b   : > { %2262 = vmatprep.subr.msk.bf16.mxu1 %vm2261_vm3, %v2360_v40  ;;  %2256 = vmatpush1.bf16.msk.msra.mxu0 %vm2255_vm12, %v2360_v40  ;;  %vm1083_vm12 = vcmp.ge.f32.partialorder %v762_v5, %v2566_v27  ;;  %vm1085_vm14 = vcmp.ge.f32.partialorder %v851_v6, %v2566_v27 }
 0x10c   : > { %2264 = vmatpush1.bf16.msk.msra.mxu1 %vm2263_vm0, %v2360_v40 }
 0x10d   : > { %v766_v7 = vpop.f32.mrb[18].mxu0  ;;  %v855_v8 = vpop.f32.mrb[18].mxu1 }
 0x10e   : > { %vm1098_vm5 = vcmp.ge.f32.partialorder %v766_v7, %v2568_v32  ;;  %vm1100_vm6 = vcmp.ge.f32.partialorder %v855_v8, %v2568_v32  ;;  %2167 = vmatmul.mubr.msk.f32.vlgmr.msra.gmra.mrb[34].mxu0 %vm1267_vm10, %v2600_v52  ;;  %v768_v9 = vpop.f32.mrb[19].mxu0  ;;  %v857_v10 = vpop.f32.mrb[19].mxu1 }
 0x10f   : > { %vm2645_vm8 = vmpackc.low %vm1098_vm5, %vm1082_vm4  ;;  %2176 = vmatmul.mubr.msk.f32.vlgmr.msra.gmra.mrb[34].mxu1 %vm1267_vm10, %v2600_v52  ;;  %vm1099_vm9 = vcmp.ge.f32.partialorder %v768_v9, %v2568_v32  ;;  %vm1101_vm11 = vcmp.ge.f32.partialorder %v857_v10, %v2568_v32  ;;  %1619 = vmatprep.mubr.f32.mxu0 %v2358_v0 }
 0x110   : > { %vm2275_vm13 = vmpackc.low %vm1100_vm6, %vm1084_vm7  ;;  %1690 = vmatprep.mubr.f32.mxu1 %v2358_v0 }
 0x111   : > { %vm2265_vm15 = vmpackc.low %vm1099_vm9, %vm1083_vm12  ;;  %v772_v12 = vpop.f32.mrb[20].mxu0  ;;  %v861_v13 = vpop.f32.mrb[20].mxu1 }
 0x112   : > { %vm2273_vm0 = vmpackc.low %vm1101_vm11, %vm1085_vm14  ;;  %2266 = vmatprep.subr.msk.bf16.mxu0 %vm2265_vm15, %v2360_v40  ;;  %v774_v14 = vpop.f32.mrb[21].mxu0  ;;  %v863_v15 = vpop.f32.mrb[21].mxu1  ;;  %vm1114_vm1 = vcmp.ge.f32.partialorder %v772_v12, %v2570_v33  ;;  %vm1116_vm4 = vcmp.ge.f32.partialorder %v861_v13, %v2570_v33 }
 0x113   : > { %2274 = vmatprep.subr.msk.bf16.mxu1 %vm2273_vm0, %v2360_v40  ;;  %2268 = vmatpush1.bf16.msk.msra.mxu0 %vm2645_vm8, %v2360_v40  ;;  %vm1115_vm8 = vcmp.ge.f32.partialorder %v774_v14, %v2570_v33  ;;  %vm1117_vm11 = vcmp.ge.f32.partialorder %v863_v15, %v2570_v33 }
 0x114   : > { %2276 = vmatpush1.bf16.msk.msra.mxu1 %vm2275_vm13, %v2360_v40 }
 0x115   : > { %v778_v16 = vpop.f32.mrb[22].mxu0  ;;  %v867_v17 = vpop.f32.mrb[22].mxu1 }
 0x116   : > { %vm1130_vm2 = vcmp.ge.f32.partialorder %v778_v16, %v2583_v43  ;;  %vm1132_vm3 = vcmp.ge.f32.partialorder %v867_v17, %v2583_v43  ;;  %v780_v18 = vpop.f32.mrb[23].mxu0  ;;  %v869_v19 = vpop.f32.mrb[23].mxu1 }
 0x117   : > { %vm2271_vm5 = vmpackc.low %vm1130_vm2, %vm1114_vm1  ;;  %vm1131_vm6 = vcmp.ge.f32.partialorder %v780_v18, %v2583_v43  ;;  %vm1133_vm7 = vcmp.ge.f32.partialorder %v869_v19, %v2583_v43 }
 0x118   : > { %vm2279_vm9 = vmpackc.low %vm1132_vm3, %vm1116_vm4 }
 0x119   : > { %vm2269_vm12 = vmpackc.low %vm1131_vm6, %vm1115_vm8  ;;  %v938_v20 = vpop.f32.mrb[24].mxu0  ;;  %v1027_v21 = vpop.f32.mrb[24].mxu1 }
 0x11a   : > { %vm2277_vm13 = vmpackc.low %vm1133_vm7, %vm1117_vm11  ;;  %2270 = vmatprep.subr.msk.bf16.mxu0 %vm2269_vm12, %v2360_v40  ;;  %v940_v22 = vpop.f32.mrb[25].mxu0  ;;  %v1029_v23 = vpop.f32.mrb[25].mxu1  ;;  %vm1086_vm14 = vcmp.ge.f32.partialorder %v938_v20, %v2566_v27  ;;  %vm1088_vm1 = vcmp.ge.f32.partialorder %v1027_v21, %v2566_v27 }
 0x11b   : > { %2278 = vmatprep.subr.msk.bf16.mxu1 %vm2277_vm13, %v2360_v40  ;;  %2272 = vmatpush1.bf16.msk.msra.mxu0 %vm2271_vm5, %v2360_v40  ;;  %vm1087_vm5 = vcmp.ge.f32.partialorder %v940_v22, %v2566_v27  ;;  %vm1089_vm7 = vcmp.ge.f32.partialorder %v1029_v23, %v2566_v27 }
 0x11c   : > { %2280 = vmatpush1.bf16.msk.msra.mxu1 %vm2279_vm9, %v2360_v40 }
 0x11d   : > { %v944_v24 = vpop.f32.mrb[26].mxu0  ;;  %v1033_v25 = vpop.f32.mrb[26].mxu1 }
 0x11e   : > { %vm1102_vm15 = vcmp.ge.f32.partialorder %v944_v24, %v2568_v32  ;;  %vm1104_vm0 = vcmp.ge.f32.partialorder %v1033_v25, %v2568_v32  ;;  %2185 = vmatmul.mubr.msk.f32.vlgmr.msra.gmra.mrb[36].mxu0 %vm1267_vm10, %v2600_v52  ;;  %v946_v26 = vpop.f32.mrb[27].mxu0  ;;  %v1035_v28 = vpop.f32.mrb[27].mxu1 }
 0x11f   : > { %vm2681_vm2 = vmpackc.low %vm1102_vm15, %vm1086_vm14  ;;  %2194 = vmatmul.mubr.msk.f32.vlgmr.msra.gmra.mrb[36].mxu1 %vm1267_vm10, %v2600_v52  ;;  %vm1103_vm3 = vcmp.ge.f32.partialorder %v946_v26, %v2568_v32  ;;  %vm1105_vm4 = vcmp.ge.f32.partialorder %v1035_v28, %v2568_v32  ;;  %1761 = vmatprep.mubr.f32.mxu0 %v2358_v0 }
 0x120   : > { %vm2291_vm6 = vmpackc.low %vm1104_vm0, %vm1088_vm1  ;;  %1832 = vmatprep.mubr.f32.mxu1 %v2358_v0 }
 0x121   : > { %vm2281_vm8 = vmpackc.low %vm1103_vm3, %vm1087_vm5  ;;  %v950_v30 = vpop.f32.mrb[28].mxu0  ;;  %v1039_v31 = vpop.f32.mrb[28].mxu1 }
 0x122   : > { %vm2289_vm9 = vmpackc.low %vm1105_vm4, %vm1089_vm7  ;;  %2282 = vmatprep.subr.msk.bf16.mxu0 %vm2281_vm8, %v2360_v40  ;;  %v952_v34 = vpop.f32.mrb[29].mxu0  ;;  %v1041_v35 = vpop.f32.mrb[29].mxu1  ;;  %vm1118_vm11 = vcmp.ge.f32.partialorder %v950_v30, %v2570_v33  ;;  %vm1120_vm14 = vcmp.ge.f32.partialorder %v1039_v31, %v2570_v33 }
 0x123   : > { %2290 = vmatprep.subr.msk.bf16.mxu1 %vm2289_vm9, %v2360_v40  ;;  %2284 = vmatpush1.bf16.msk.msra.mxu0 %vm2681_vm2, %v2360_v40  ;;  %vm1119_vm2 = vcmp.ge.f32.partialorder %v952_v34, %v2570_v33  ;;  %vm1121_vm4 = vcmp.ge.f32.partialorder %v1041_v35, %v2570_v33 }
 0x124   : > { %2292 = vmatpush1.bf16.msk.msra.mxu1 %vm2291_vm6, %v2360_v40 }
 0x125   : > { %v956_v32 = vpop.f32.mrb[30].mxu0  ;;  %v1045_v36 = vpop.f32.mrb[30].mxu1 }
 0x126   : > { %vm1134_vm12 = vcmp.ge.f32.partialorder %v956_v32, %v2583_v43  ;;  %vm1136_vm13 = vcmp.ge.f32.partialorder %v1045_v36, %v2583_v43  ;;  %v958_v27 = vpop.f32.mrb[31].mxu0  ;;  %v1047_v37 = vpop.f32.mrb[31].mxu1 }
 0x127   : > { %vm2287_vm15 = vmpackc.low %vm1134_vm12, %vm1118_vm11  ;;  %vm1135_vm0 = vcmp.ge.f32.partialorder %v958_v27, %v2583_v43  ;;  %vm1137_vm1 = vcmp.ge.f32.partialorder %v1047_v37, %v2583_v43 }
 0x128   : > { %vm2295_vm3 = vmpackc.low %vm1136_vm13, %vm1120_vm14 }
 0x129   : > { %vm2285_vm5 = vmpackc.low %vm1135_vm0, %vm1119_vm2 }
 0x12a   : > { %vm2293_vm6 = vmpackc.low %vm1137_vm1, %vm1121_vm4  ;;  %2286 = vmatprep.subr.msk.bf16.mxu0 %vm2285_vm5, %v2360_v40 }
 0x12b   : > { %2294 = vmatprep.subr.msk.bf16.mxu1 %vm2293_vm6, %v2360_v40  ;;  %2288 = vmatpush1.bf16.msk.msra.mxu0 %vm2287_vm15, %v2360_v40 }
 0x12c   : > { %2296 = vmatpush1.bf16.msk.msra.mxu1 %vm2295_vm3, %v2360_v40 }
 0x12e   : > { %2203 = vmatmul.mubr.msk.f32.vlgmr.msra.gmra.mrb[38].mxu0 %vm1267_vm10, %v2600_v52 }
 0x12f   : > { %2212 = vmatmul.mubr.msk.f32.vlgmr.msra.gmra.mrb[38].mxu1 %vm1267_vm10, %v2600_v52 }
 0x1d1   : > { %v1337_v33 = vpop.f32.mrb[32].mxu0 }
 0x1d2   : > { %vm1845_vm7 = vcmp.ge.f32.partialorder %v1337_v33, %v2715_v38  ;;  %v1408_v39 = vpop.f32.mrb[32].mxu1  ;;  %v1339_v41 = vpop.f32.mrb[33].mxu0 }
 0x1d3   : > { %v2213_v42 = vsel %vm1845_vm7, 1.0, %v2358_v0  ;;  %vm1847_vm8 = vcmp.ge.f32.partialorder %v1408_v39, %v2715_v38  ;;  %vm1846_vm9 = vcmp.ge.f32.partialorder %v1339_v41, %v2715_v38  ;;  %v1410_v40 = vpop.f32.mrb[33].mxu1 }
 0x1d4   : > { %v2215_v43 = vsel %vm1847_vm8, 1.0, %v2358_v0  ;;  %v2214_v44 = vsel %vm1846_vm9, 1.0, %v2358_v0  ;;  %vm1848_vm10 = vcmp.ge.f32.partialorder %v1410_v40, %v2715_v38 }
 0x1d5   : > { %v1909_v45 = vcombine.low %v2213_v42, %v2214_v44  ;;  %v2216_v46 = vsel %vm1848_vm10, 1.0, %v2358_v0 }
 0x1d6   : > { %v1910_v47 = vcombine.low %v2215_v43, %v2216_v46 }
 0x1d7   : > { %1925 = vst [vmem:[%s2727_s28] sm:$0xff] %v1909_v45 }
 0x1d8   : > { %1926 = vst [vmem:[%s2727_s28 + $0x8] sm:$0xff] %v1910_v47 }
 0x1e1   : > { %v1479_v48 = vpop.f32.mrb[34].mxu0 }
 0x1e2   : > { %vm1849_vm11 = vcmp.ge.f32.partialorder %v1479_v48, %v2715_v38  ;;  %v1550_v49 = vpop.f32.mrb[34].mxu1  ;;  %v1481_v50 = vpop.f32.mrb[35].mxu0 }
 0x1e3   : > { %v2217_v51 = vsel %vm1849_vm11, 1.0, %v2358_v0  ;;  %vm1851_vm12 = vcmp.ge.f32.partialorder %v1550_v49, %v2715_v38  ;;  %vm1850_vm13 = vcmp.ge.f32.partialorder %v1481_v50, %v2715_v38  ;;  %v1552_v52 = vpop.f32.mrb[35].mxu1 }
 0x1e4   : > { %v2219_v53 = vsel %vm1851_vm12, 1.0, %v2358_v0  ;;  %v2218_v54 = vsel %vm1850_vm13, 1.0, %v2358_v0  ;;  %vm1852_vm14 = vcmp.ge.f32.partialorder %v1552_v52, %v2715_v38 }
 0x1e5   : > { %v1911_v55 = vcombine.low %v2217_v51, %v2218_v54  ;;  %v2220_v56 = vsel %vm1852_vm14, 1.0, %v2358_v0 }
 0x1e6   : > { %v1912_v57 = vcombine.low %v2219_v53, %v2220_v56 }
 0x1e7   : > { %1927 = vst [vmem:[%s2727_s28 + $0x10] sm:$0xff] %v1911_v55 }
 0x1e8   : > { %1928 = vst [vmem:[%s2727_s28 + $0x18] sm:$0xff] %v1912_v57 }
 0x1f1   : > { %v1621_v58 = vpop.f32.mrb[36].mxu0 }
 0x1f2   : > { %vm1853_vm15 = vcmp.ge.f32.partialorder %v1621_v58, %v2715_v38  ;;  %v1692_v59 = vpop.f32.mrb[36].mxu1  ;;  %v1623_v60 = vpop.f32.mrb[37].mxu0 }
 0x1f3   : > { %v2221_v61 = vsel %vm1853_vm15, 1.0, %v2358_v0  ;;  %vm1855_vm0 = vcmp.ge.f32.partialorder %v1692_v59, %v2715_v38  ;;  %vm1854_vm1 = vcmp.ge.f32.partialorder %v1623_v60, %v2715_v38  ;;  %v1694_v62 = vpop.f32.mrb[37].mxu1 }
 0x1f4   : > { %v2223_v63 = vsel %vm1855_vm0, 1.0, %v2358_v0  ;;  %v2222_v1 = vsel %vm1854_vm1, 1.0, %v2358_v0  ;;  %vm1856_vm2 = vcmp.ge.f32.partialorder %v1694_v62, %v2715_v38 }
 0x1f5   : > { %v1913_v2 = vcombine.low %v2221_v61, %v2222_v1  ;;  %v2224_v3 = vsel %vm1856_vm2, 1.0, %v2358_v0 }
 0x1f6   : > { %v1914_v4 = vcombine.low %v2223_v63, %v2224_v3 }
 0x1f7   : > { %1929 = vst [vmem:[%s2727_s28 + $0x20] sm:$0xff] %v1913_v2 }
 0x1f8   : > { %1930 = vst [vmem:[%s2727_s28 + $0x28] sm:$0xff] %v1914_v4 }
 0x201   : > { %v1763_v5 = vpop.f32.mrb[38].mxu0 }
 0x202   : > { %vm1857_vm3 = vcmp.ge.f32.partialorder %v1763_v5, %v2715_v38  ;;  %v1834_v6 = vpop.f32.mrb[38].mxu1  ;;  %v1765_v7 = vpop.f32.mrb[39].mxu0 }
 0x203   : > { %v2225_v8 = vsel %vm1857_vm3, 1.0, %v2358_v0  ;;  %vm1859_vm4 = vcmp.ge.f32.partialorder %v1834_v6, %v2715_v38  ;;  %vm1858_vm5 = vcmp.ge.f32.partialorder %v1765_v7, %v2715_v38  ;;  %v1836_v9 = vpop.f32.mrb[39].mxu1 }
 0x204   : > { %v2227_v10 = vsel %vm1859_vm4, 1.0, %v2358_v0  ;;  %v2226_v11 = vsel %vm1858_vm5, 1.0, %v2358_v0  ;;  %vm1860_vm6 = vcmp.ge.f32.partialorder %v1836_v9, %v2715_v38 }
 0x205   : > { %v1915_v12 = vcombine.low %v2225_v8, %v2226_v11  ;;  %v2228_v13 = vsel %vm1860_vm6, 1.0, %v2358_v0 }
 0x206   : > { %v1916_v14 = vcombine.low %v2227_v10, %v2228_v13 }
 0x207   : > { %1931 = vst [vmem:[%s2727_s28 + $0x30] sm:$0xff] %v1915_v12 }
 0x208   : > { %1932 = vst [vmem:[%s2727_s28 + $0x38] sm:$0xff] %v1916_v14 }
 0x209 PF: > { %s15_s20 = sadd.s32 1, %s2356_s20   ;;  %s2785_s18 = smov %s2352_s19 }
 0x20a   : > { %p12_p5 = scmp.ge.s32.totalorder %s15_s20, 4   ;;  %s2786_s19 = smov %s2788_s21 }
 0x20c   :  { %14 = sbr.rel (!%p12_p5) target bundleno = 2 (0x2), region = 70 }

</bundles_post_ra>
